<compile_context>
chip_gen: v7x
topology: tpu7x:2x2x1
jax: 0.10.0
libtpu: 0.0.40
codegen_flags: <defaults>
</compile_context>

<pallas_src>
import functools

import jax
import jax.numpy as jnp
from jax.experimental import pallas as pl
from jax.experimental.pallas import tpu as pltpu


def _soft_ce_kernel(x_ref, t_ref, o_ref, *, total_rows, block_rows):
    i = pl.program_id(0)

    x = x_ref[...].astype(jnp.float32)
    t = t_ref[...].astype(jnp.float32)

    # Numerically stable per-row log-sum-exp over the class (lane) axis.
    m = jnp.max(x, axis=1, keepdims=True)
    lse = jnp.log(jnp.sum(jnp.exp(x - m), axis=1, keepdims=True))

    # Fused:  sum_c t * (m + lse - x)  ==  (m + lse) * sum_c(t) - sum_c(t * x)
    t_sum = jnp.sum(t, axis=1, keepdims=True)
    tx_sum = jnp.sum(t * x, axis=1, keepdims=True)
    per_row = (m + lse) * t_sum - tx_sum                     # (block_rows, 1)

    # Mask padded rows of the (possibly ragged) last tile; jnp.where discards
    # any NaN/Inf produced by the unspecified padded data.
    row_ids = i * block_rows + jax.lax.broadcasted_iota(
        jnp.int32, per_row.shape, 0)
    per_row = jnp.where(row_ids < total_rows, per_row, 0.0)

    partial = jnp.sum(per_row)
    # Lane-dense (1,8,128) slab -> unmasked vector store; wrapper reads [i,0,0].
    o_ref[...] = jnp.broadcast_to(partial, o_ref.shape)


def _sublane_rows(dtype):
    # Rows packed per vreg sublane group: f32 -> 8, bf16 -> 16, int8/fp8 -> 32.
    return max(8, 32 // jnp.dtype(dtype).itemsize)


def _vmem_capacity_bytes():
    # Generation-aware query; fall back to the most conservative value (v7x
    # has 64 MiB VMEM per TensorCore) if the query is unavailable.
    try:
        info = pltpu.get_tpu_info()
        cap = getattr(info, "vmem_capacity_bytes", None)
        if cap:
            return int(cap)
    except Exception:
        pass
    return 64 * 1024 * 1024


def soft_cross_entropy(inputs, target, *, block_rows=None):
    """inputs: (N, C) logits; target: (N, C) soft labels. Returns scalar f32 loss."""
    assert inputs.shape == target.shape and inputs.ndim == 2
    n, c = inputs.shape
    in_itemsize = jnp.dtype(inputs.dtype).itemsize
    tg_itemsize = jnp.dtype(target.dtype).itemsize

    sublane = max(_sublane_rows(inputs.dtype), _sublane_rows(target.dtype))

    # Per-row VMEM footprint:
    #   * double-buffered DMA tiles for both inputs, in their storage dtype
    #   * ~4 full-block f32 temporaries (x/t upcasts, exp(x-m), t*x)
    dma_per_row = 2 * c * in_itemsize + 2 * c * tg_itemsize
    temp_per_row = 4 * c * 4
    per_row_bytes = dma_per_row + temp_per_row
    fixed_bytes = 2 * 8 * 128 * 4 + (2 << 20)        # output slabs + margin

    # Generation-aware budgets: v5e/v6e have 128 MiB VMEM, v7x 64 MiB per TC.
    vmem_cap = _vmem_capacity_bytes()
    if vmem_cap >= 100 * 1024 * 1024:                 # v5e / v6e
        working_budget = 80 * 1024 * 1024
        vmem_ceiling = 100 * 1024 * 1024
    else:                                             # v7x (or unknown -> safe)
        working_budget = 36 * 1024 * 1024
        vmem_ceiling = 48 * 1024 * 1024

    # Largest legal block under the VMEM ceiling (multiple of the sublane tile).
    max_rows = (vmem_ceiling - fixed_bytes) // per_row_bytes
    max_rows = max(sublane, (max_rows // sublane) * sublane)

    if block_rows is None:
        # Byte-based sizing: as many rows as the working budget allows.
        block_rows = max(sublane, working_budget // per_row_bytes)
        # Megacore: v7x has 2 TensorCores to shard the "parallel" grid axis
        # over — prefer >= 4 grid steps when each input block stays >= ~4 MiB.
        four_step_rows = -(-n // 4)
        if four_step_rows * c * min(in_itemsize, tg_itemsize) >= 4 * 1024 * 1024:
            block_rows = min(block_rows, four_step_rows)

    # Round (derived or user-supplied) block_rows up to the sublane tile, then
    # clamp the TILE (never the vmem limit) to the per-generation ceiling.
    block_rows = max(sublane, -(-block_rows // sublane) * sublane)
    block_rows = min(block_rows, max_rows)

    # A single block covering the full row dim is always legal regardless of
    # sublane alignment.
    tn = n if n <= block_rows else block_rows
    grid = pl.cdiv(n, tn)

    # Never clamp the limit below the actual need (the tile was clamped above).
    vmem_need = tn * per_row_bytes + fixed_bytes
    vmem_limit = int(max(vmem_need, 16 * 1024 * 1024))

    kernel = functools.partial(_soft_ce_kernel, total_rows=n, block_rows=tn)

    partials = pl.pallas_call(
        kernel,
        out_shape=jax.ShapeDtypeStruct((grid, 8, 128), jnp.float32),
        grid_spec=pltpu.PrefetchScalarGridSpec(
            num_scalar_prefetch=0,
            grid=(grid,),
            in_specs=[
                pl.BlockSpec((tn, c), lambda i: (i, 0)),
                pl.BlockSpec((tn, c), lambda i: (i, 0)),
            ],
            out_specs=pl.BlockSpec((1, 8, 128), lambda i: (i, 0, 0)),
        ),
        compiler_params=pltpu.CompilerParams(
            dimension_semantics=("parallel",),
            vmem_limit_bytes=vmem_limit,
        ),
    )(inputs, target)

    # Final reduce + divide by the TOTAL sample count (not the tile height).
    return jnp.sum(partials[:, 0, 0]) / jnp.float32(n)


def soft_cross_entropy_ref(inputs, target):
    # Pure-JAX reference matching the PyTorch module.
    ls = jax.nn.log_softmax(inputs.astype(jnp.float32), axis=1)
    n = target.shape[0]
    return jnp.sum(-ls * target.astype(jnp.float32)) / n


if __name__ == "__main__":
    key = jax.random.PRNGKey(0)
    k1, k2, k3, k4, k5, k6 = jax.random.split(key, 6)

    # Case 1: small single-block shape (batch=8, classes=32), auto block sizing.
    N1, C1 = 8, 32
    logits1 = jax.random.normal(k1, (N1, C1), dtype=jnp.float32)
    target1 = jax.nn.softmax(jax.random.normal(k2, (N1, C1), dtype=jnp.float32), axis=1)
    loss1 = soft_cross_entropy(logits1, target1)
    jax.block_until_ready(loss1)
    ref1 = soft_cross_entropy_ref(logits1, target1)
    assert jnp.allclose(loss1, ref1, rtol=1e-5, atol=1e-5), (loss1, ref1)

    # Case 2: tiled + ragged rows (N=20, 8-row blocks -> 3 grid steps, last masked).
    N2, C2 = 20, 32
    logits2 = jax.random.normal(k3, (N2, C2), dtype=jnp.float32)
    target2 = jax.nn.softmax(jax.random.normal(k4, (N2, C2), dtype=jnp.float32), axis=1)
    loss2 = soft_cross_entropy(logits2, target2, block_rows=8)
    jax.block_until_ready(loss2)
    ref2 = soft_cross_entropy_ref(logits2, target2)
    assert jnp.allclose(loss2, ref2, rtol=1e-5, atol=1e-5), (loss2, ref2)

    # Case 3: bf16 inputs stay bf16 through the DMA (half the HBM traffic), are
    # upcast to f32 in-kernel; user block_rows=8 is rounded up to the bf16
    # sublane tile (16 rows) so vregs stay fully packed.
    logits3 = logits2.astype(jnp.bfloat16)
    target3 = target2.astype(jnp.bfloat16)
    loss3 = soft_cross_entropy(logits3, target3, block_rows=8)
    jax.block_until_ready(loss3)
    ref3 = soft_cross_entropy_ref(logits3, target3)
    assert jnp.allclose(loss3, ref3, rtol=1e-2, atol=1e-2), (loss3, ref3)

    # Case 4: slightly larger auto-sized run exercising the byte-based
    # heuristic path (still small: N=64, C=128).
    N4, C4 = 64, 128
    logits4 = jax.random.normal(k5, (N4, C4), dtype=jnp.float32)
    target4 = jax.nn.softmax(jax.random.normal(k6, (N4, C4), dtype=jnp.float32), axis=1)
    loss4 = soft_cross_entropy(logits4, target4)
    jax.block_until_ready(loss4)
    ref4 = soft_cross_entropy_ref(logits4, target4)
    assert jnp.allclose(loss4, ref4, rtol=1e-5, atol=1e-5), (loss4, ref4)

    print("KERNEL_OK")
</pallas_src>

<mosaic_0001>
module attributes {stable_mosaic.version = 11 : i64} {
  func.func @_soft_ce_kernel(%arg0: i32, %arg1: memref<8x32xf32, #tpu.memory_space<vmem>>, %arg2: memref<8x32xf32, #tpu.memory_space<vmem>>, %arg3: memref<1x8x128xf32, #tpu.memory_space<vmem>>) attributes {dimension_semantics = [#tpu.dimension_semantics<parallel>], iteration_bounds = array<i64: 1>, scalar_prefetch = 0 : i64, scratch_operands = 0 : i64, tpu.core_type = #tpu.core_type<tc>, window_params = [{transform_indices = @transform_0, window_bounds = array<i64: 8, 32>}, {transform_indices = @transform_1, window_bounds = array<i64: 8, 32>}, {transform_indices = @transform_2, window_bounds = array<i64: 1, 8, 128>}]} {
    %c0 = arith.constant 0 : index
    %c0_0 = arith.constant 0 : index
    %0 = vector.load %arg1[%c0, %c0_0] : memref<8x32xf32, #tpu.memory_space<vmem>>, vector<8x32xf32>
    %c0_1 = arith.constant 0 : index
    %c0_2 = arith.constant 0 : index
    %1 = vector.load %arg2[%c0_1, %c0_2] : memref<8x32xf32, #tpu.memory_space<vmem>>, vector<8x32xf32>
    %cst = arith.constant dense<0xFF800000> : vector<8xf32>
    %2 = vector.multi_reduction <maximumf>, %0, %cst [1] : vector<8x32xf32> to vector<8xf32>
    %3 = vector.shape_cast %2 : vector<8xf32> to vector<8x1xf32>
    %4 = vector.broadcast %3 : vector<8x1xf32> to vector<8x32xf32>
    %5 = arith.subf %0, %4 : vector<8x32xf32>
    %6 = math.exp %5 : vector<8x32xf32>
    %cst_3 = arith.constant dense<0.000000e+00> : vector<8xf32>
    %7 = vector.multi_reduction <add>, %6, %cst_3 [1] : vector<8x32xf32> to vector<8xf32>
    %8 = vector.shape_cast %7 : vector<8xf32> to vector<8x1xf32>
    %9 = math.log %8 : vector<8x1xf32>
    %cst_4 = arith.constant dense<0.000000e+00> : vector<8xf32>
    %10 = vector.multi_reduction <add>, %1, %cst_4 [1] : vector<8x32xf32> to vector<8xf32>
    %11 = vector.shape_cast %10 : vector<8xf32> to vector<8x1xf32>
    %12 = arith.mulf %1, %0 : vector<8x32xf32>
    %cst_5 = arith.constant dense<0.000000e+00> : vector<8xf32>
    %13 = vector.multi_reduction <add>, %12, %cst_5 [1] : vector<8x32xf32> to vector<8xf32>
    %14 = vector.shape_cast %13 : vector<8xf32> to vector<8x1xf32>
    %15 = arith.addf %3, %9 : vector<8x1xf32>
    %16 = arith.mulf %15, %11 : vector<8x1xf32>
    %17 = arith.subf %16, %14 : vector<8x1xf32>
    %c8_i32 = arith.constant 8 : i32
    %18 = arith.muli %arg0, %c8_i32 : i32
    %19 = tpu.iota {dimensions = array<i32: 0>} : vector<8x1xi32>
    %20 = vector.broadcast %18 : i32 to vector<8x1xi32>
    %21 = arith.addi %20, %19 : vector<8x1xi32>
    %c8_i32_6 = arith.constant 8 : i32
    %22 = vector.broadcast %c8_i32_6 : i32 to vector<8x1xi32>
    %23 = arith.cmpi slt, %21, %22 : vector<8x1xi32>
    %cst_7 = arith.constant 0.000000e+00 : f32
    %24 = vector.broadcast %cst_7 : f32 to vector<8x1xf32>
    %25 = arith.select %23, %17, %24 : vector<8x1xi1>, vector<8x1xf32>
    %26 = vector.shape_cast %25 : vector<8x1xf32> to vector<1x8x1xf32>
    %cst_8 = arith.constant dense<0.000000e+00> : vector<1xf32>
    %27 = vector.multi_reduction <add>, %26, %cst_8 [1, 2] : vector<1x8x1xf32> to vector<1xf32>
    %28 = vector.shape_cast %27 : vector<1xf32> to vector<1x1x1xf32>
    %29 = vector.extract %28[0, 0, 0] : f32 from vector<1x1x1xf32>
    %30 = vector.broadcast %29 : f32 to vector<1x8x128xf32>
    %c0_9 = arith.constant 0 : index
    %c0_10 = arith.constant 0 : index
    %c0_11 = arith.constant 0 : index
    %31 = vector.load %arg3[%c0_9, %c0_10, %c0_11] : memref<1x8x128xf32, #tpu.memory_space<vmem>>, vector<1x8x128xf32>
    tpu.vector_store %arg3[%c0_9, %c0_10, %c0_11], %30 {strides = array<i32>} : memref<1x8x128xf32, #tpu.memory_space<vmem>>, vector<1x8x128xf32>,
    return
  }
  func.func @transform_0(%arg0: i32) -> (i32, i32) {
    %c0_i32 = arith.constant 0 : i32
    %c0_i32_0 = arith.constant 0 : i32
    return %arg0, %c0_i32 : i32, i32
  }
  func.func @transform_1(%arg0: i32) -> (i32, i32) {
    %c0_i32 = arith.constant 0 : i32
    %c0_i32_0 = arith.constant 0 : i32
    return %arg0, %c0_i32 : i32, i32
  }
  func.func @transform_2(%arg0: i32) -> (i32, i32, i32) {
    %c0_i32 = arith.constant 0 : i32
    %c0_i32_0 = arith.constant 0 : i32
    %c0_i32_1 = arith.constant 0 : i32
    return %arg0, %c0_i32, %c0_i32_0 : i32, i32, i32
  }
}

</mosaic_0001>

<bundles_post_ra>
// kernel: tpu_custom_call.1
= control target key start
LH: loop header
LB: loop body
LE: loop exit
PB: predicated region body
PF: predicated region fallthrough
CT: control target
= control target key end

     0   :  { %7 = vsyncpa [#allocation3], 0  ;;  %s231_s0 = inlined_call_operand.hbm [shape: f32[8,32], index: 0, kind: input, shape index: {}]   ;;  %s232_s1 = inlined_call_operand.hbm [shape: f32[8,32], index: 1, kind: input, shape index: {}]   ;;  %s233_s2 = inlined_call_operand.hbm [shape: f32[1,8,128], index: 2, kind: output, shape index: {}]  }
   0x1   :  { %8 = vsyncpa [#allocation6], 0 }
   0x2   :  { %9 = vsyncpa [#allocation4], 0  ;;  %s177_s9 = smov [#allocation2]   ;;  %s178_s11 = smov [#allocation5]  }
   0x3   :  { %s16_s10 = sshll.u32 %s177_s9, 4  ;;  %s26_s12 = sshll.u32 %s178_s11, 4  ;;  %s17_s10 = int_to_ptr.vmem [resolvable:$true] %s16_s10  ;;  %s27_s12 = int_to_ptr.vmem [resolvable:$true] %s26_s12 }
   0x4   :  { %s105_s15 = scalar_lea.hbm %s231_s0, 128 }
   0x5   :  { %p106_p0 = scmp.ne.s32.totalorder %s231_s0, %s105_s15  ;;  %p109_p1 = scmp.lt.u32.totalorder %s105_s15, %s231_s0 }
   0x7   :  { %p111_p2 = pnand %p109_p1, %p106_p0 }
   0x9   :  { %114 = shalt.err (!%p111_p2)
}
   0xa   :  { %s115_s20 = scalar_lea.vmem %s17_s10, 128  ;;  %p120_p4 = scmp.lt.s32.totalorder %s17_s10, %s17_s10 }
   0xb   :  { %p116_p3 = scmp.ne.s32.totalorder %s17_s10, %s115_s20  ;;  %p121_p5 = scmp.lt.s32.totalorder %s115_s20, %s115_s20 }
   0xd   :  { %p122_p6 = por %p121_p5, %p120_p4 }
   0xf   :  { %p123_p7 = pnand %p122_p6, %p116_p3 }
  0x11   :  { %126 = shalt.err (!%p123_p7)
}
  0x12   :  { %19 = dma.hbm_to_vmem [thread:$0]  %s231_s0, 128, %s17_s10, [#allocation3]  }
  0x13   :  { %s127_s25 = scalar_lea.hbm %s232_s1, 128 }
  0x14   :  { %p128_p8 = scmp.ne.s32.totalorder %s232_s1, %s127_s25  ;;  %p131_p9 = scmp.lt.u32.totalorder %s127_s25, %s232_s1 }
  0x16   :  { %p133_p10 = pnand %p131_p9, %p128_p8 }
  0x18   :  { %136 = shalt.err (!%p133_p10)
}
  0x19   :  { %s137_s30 = scalar_lea.vmem %s27_s12, 128  ;;  %p142_p12 = scmp.lt.s32.totalorder %s27_s12, %s27_s12 }
  0x1a   :  { %p138_p11 = scmp.ne.s32.totalorder %s27_s12, %s137_s30  ;;  %p143_p13 = scmp.lt.s32.totalorder %s137_s30, %s137_s30 }
  0x1c   :  { %p144_p0 = por %p143_p13, %p142_p12 }
  0x1e   :  { %p145_p1 = pnand %p144_p0, %p138_p11 }
  0x20   :  { %148 = shalt.err (!%p145_p1)
}
  0x21   :  { %29 = dma.hbm_to_vmem [thread:$0]  %s232_s1, 128, %s27_s12, [#allocation6]  }
  0x22   :  { %171 = dma.done.wait [#allocation3], 128  }
  0x23   :  { %172 = vsyncadd [#allocation3], 4294967168 }
  0x24   :  { %173 = dma.done.wait [#allocation6], 128  }
  0x25   :  { %174 = vsyncadd [#allocation6], 4294967168  ;;  %vm38_vm0 = vcmask 261120   ;;  %v36_v0 = vld [vmem:[#allocation2] sm:$0xff]  ;;  %v37_v2 = vld [vmem:[#allocation5] sm:$0xff]  ;;  %vm67_vm1 = vcmask 7168  }
  0x26   :  { %v39_v1 = vsel %vm38_vm0, %v36_v0, -inf  ;;  %v50_v3 = vsel %vm38_vm0, %v37_v2, 0.0  ;;  %v53_v4 = vmul.f32 %v37_v2, %v36_v0  ;;  %s179_s1 = smov [#allocation7]  }
  0x27   :  { %40 = vmax.xlane.f32.xlu0 %v39_v1  ;;  %51 = vadd.xlane.f32.xlu1 %v50_v3  ;;  %s86_s4 = sshll.u32 %s179_s1, 4  ;;  %s87_s4 = int_to_ptr.vmem [resolvable:$true] %s86_s4 }
  0x28   :  { %v54_v5 = vsel %vm38_vm0, %v53_v4, 0.0  ;;  %s149_s6 = scalar_lea.vmem %s87_s4, 128  ;;  %p154_p3 = scmp.lt.s32.totalorder %s87_s4, %s87_s4 }
  0x29   :  { %p150_p2 = scmp.ne.s32.totalorder %s87_s4, %s149_s6  ;;  %p155_p4 = scmp.lt.s32.totalorder %s149_s6, %s149_s6 }
  0x2b   :  { %55 = vadd.xlane.f32.xlu1 %v54_v5  ;;  %p156_p5 = por %p155_p4, %p154_p3 }
  0x2d   :  { %p157_p6 = pnand %p156_p5, %p150_p2 }
  0xb4   :  { %v41_v6 = vpop.xlane.xlu0 %40  ;;  %v52_v12 = vpop.xlane.xlu1 %51 }
  0xb5   :  { %v42_v7 = vsub.f32 %v36_v0, %v41_v6 }
  0xb7   :  { %v43_v8 = vmul.f32 1.442695, %v42_v7 }
  0xb8   :  { %v56_v16 = vpop.xlane.xlu1 %55 }
  0xb9   :  { %101 = vpow2.f32 %v43_v8 }
  0xc3   :  { %v102_v9 = vpop.eup %101 }
  0xc4   :  { %v45_v10 = vsel %vm38_vm0, %v102_v9, 0.0 }
  0xc5   :  { %46 = vadd.xlane.f32.xlu0 %v45_v10 }
 0x152   :  { %v47_v11 = vpop.xlane.xlu0 %46 }
 0x153   :  { %103 = vlog2.f32 %v47_v11 }
 0x15d   :  { %v104_v13 = vpop.eup %103 }
 0x15e   :  { %v49_v14 = vmul.f32 0.6931472, %v104_v13 }
 0x160   :  { %v57_v15 = vadd.f32 %v49_v14, %v41_v6 }
 0x162   :  { %v58_v17 = vmul.f32 %v57_v15, %v52_v12 }
 0x164   :  { %v59_v18 = vsub.f32 %v58_v17, %v56_v16 }
 0x166   :  { %v68_v19 = vsel %vm67_vm1, %v59_v18, 0.0 }
 0x167   :  { %69 = vadd.xlane.f32.xlu0 %v68_v19 }
 0x1f4   :  { %v70_v20 = vpop.xlane.xlu0 %69 }
 0x1f5   :  { %v71_v21 = vrot.slane %v70_v20, 4 }
 0x1f7   :  { %v72_v22 = vadd.f32 %v71_v21, %v70_v20 }
 0x1f9   :  { %v73_v23 = vrot.slane %v72_v22, 2 }
 0x1fb   :  { %v74_v24 = vadd.f32 %v73_v23, %v72_v22 }
 0x1fd   :  { %v75_v25 = vrot.slane %v74_v24, 1 }
 0x1ff   :  { %v76_v26 = vadd.f32 %v75_v25, %v74_v24 }
 0x201   :  { %96 = vpush %v76_v26 }
 0x232   :  { %s97_s5 = spop %96 }
 0x233   :  { %v78_v27 = vstv %s97_s5 }
 0x234   :  { %79 = vst [vmem:[#allocation7] sm:$0xff] %v78_v27 }
 0x235   :  { %160 = shalt.err (!%p157_p6)
}
 0x236   :  { %s161_s9 = scalar_lea.hbm %s233_s2, 128 }
 0x237   :  { %p162_p7 = scmp.ne.s32.totalorder %s233_s2, %s161_s9  ;;  %p165_p8 = scmp.lt.u32.totalorder %s161_s9, %s233_s2 }
 0x239   :  { %p167_p9 = pnand %p165_p8, %p162_p7 }
 0x23b   :  { %170 = shalt.err (!%p167_p9)
}
 0x23c   :  { %89 = dma.vmem_to_hbm [thread:$0]  %s87_s4, 128, %s233_s2, [#allocation4]  }
 0x23d   :  { %175 = dma.done.wait [#allocation4], 128  }
 0x23e   :  { %176 = vsyncadd [#allocation4], 4294967168 }
 0x23f   :  { %93 = vsyncpa [#allocation3], 1 }
 0x240   :  { %94 = vsyncpa [#allocation6], 1 }
 0x241   :  { %95 = vsyncpa [#allocation4], 1 }

</bundles_post_ra>
